<compile_context>
chip_gen: v6e
topology: v6e:2x2x1
jax: 0.10.0
libtpu: 0.0.40
codegen_flags: <defaults>
</compile_context>

<pallas_src>
import jax
import jax.numpy as jnp
from jax.experimental import pallas as pl
from jax.experimental.pallas import tpu as pltpu

LN_EPS = 1e-12  # BERT layer_norm_eps


def bert_embedding_kernel(ids_ref, word_hbm, pos_ref, gamma_ref, beta_ref,
                          o_ref, rows_ref, sems_ref):
    # ids_ref   : (B*S,)          int32  SMEM (scalar prefetch)
    # word_hbm  : (V, H)          f32    HBM (pl.ANY) — manual DMA gather
    # pos_ref   : (seq_tile, H)   f32    VMEM (position rows + type-0 row)
    # gamma_ref : (1, H)          f32    VMEM (LayerNorm weight)
    # beta_ref  : (1, H)          f32    VMEM (LayerNorm bias)
    # o_ref     : (1, seq_tile, H) f32   VMEM (output block)
    # rows_ref  : (seq_tile, H)   f32    VMEM scratch (gathered word rows)
    # sems_ref  : (seq_tile,)     DMA semaphores
    b = pl.program_id(0)
    st = pl.program_id(1)
    seq_tile, _ = rows_ref.shape
    seq_len = seq_tile * pl.num_programs(1)
    vocab = word_hbm.shape[0]
    base = b * seq_len + st * seq_tile

    # Issue all row-gather DMAs for this tile (they run concurrently).
    @pl.loop(0, seq_tile)
    def _issue(t):
        tok = ids_ref[base + t]
        tok = jnp.minimum(jnp.maximum(tok, 0), vocab - 1)  # clamp OOB ids
        pltpu.make_async_copy(word_hbm.at[tok], rows_ref.at[t],
                              sems_ref.at[t]).start()

    # Wait for every row before touching the buffer.
    @pl.loop(0, seq_tile)
    def _wait(t):
        pltpu.make_async_copy(word_hbm.at[0], rows_ref.at[t],
                              sems_ref.at[t]).wait()

    emb = rows_ref[...] + pos_ref[...]          # word + (pos + type0)

    # LayerNorm over hidden dim (f32)
    mean = jnp.mean(emb, axis=-1, keepdims=True)
    centered = emb - mean
    var = jnp.mean(centered * centered, axis=-1, keepdims=True)
    normed = centered * jax.lax.rsqrt(var + LN_EPS)
    out = normed * gamma_ref[...] + beta_ref[...]

    o_ref[0, :, :] = out.astype(o_ref.dtype)


def bert_embedding(input_tokens, word_emb, pos_emb, type_emb, gamma, beta,
                   *, seq_tile=None):
    """input_tokens: (B, S) int -> (B, S, H) float32."""
    B, S = input_tokens.shape
    V, H = word_emb.shape

    if seq_tile is None:
        seq_tile = S
        for cand in (128, 64, 32, 16, 8):       # largest divisor <= 128
            if S % cand == 0:
                seq_tile = cand
                break
    assert S % seq_tile == 0, "seq_tile must divide S"

    ids_flat = input_tokens.reshape(B * S).astype(jnp.int32)   # SMEM scalars
    pos_rows = (pos_emb[:S] + type_emb[0:1]).astype(jnp.float32)  # (S, H)
    gamma2 = gamma.reshape(1, H).astype(jnp.float32)
    beta2 = beta.reshape(1, H).astype(jnp.float32)
    word_f32 = word_emb.astype(jnp.float32)

    grid = (B, S // seq_tile)

    grid_spec = pltpu.PrefetchScalarGridSpec(
        num_scalar_prefetch=1,                   # ids -> SMEM
        grid=grid,
        in_specs=[
            pl.BlockSpec(memory_space=pl.ANY),                       # word table in HBM
            pl.BlockSpec((seq_tile, H), lambda b, st, ids: (st, 0)),  # pos(+type) rows
            pl.BlockSpec((1, H), lambda b, st, ids: (0, 0)),          # LN gamma
            pl.BlockSpec((1, H), lambda b, st, ids: (0, 0)),          # LN beta
        ],
        out_specs=pl.BlockSpec((1, seq_tile, H),
                               lambda b, st, ids: (b, st, 0)),
        scratch_shapes=[
            pltpu.VMEM((seq_tile, H), jnp.float32),      # gathered rows
            pltpu.SemaphoreType.DMA((seq_tile,)),        # one sem per row DMA
        ],
    )

    return pl.pallas_call(
        bert_embedding_kernel,
        out_shape=jax.ShapeDtypeStruct((B, S, H), jnp.float32),
        grid_spec=grid_spec,
        compiler_params=pltpu.CompilerParams(
            dimension_semantics=("parallel", "parallel")),
    )(ids_flat, word_f32, pos_rows, gamma2, beta2)


def bert_embedding_ref(input_tokens, word_emb, pos_emb, type_emb, gamma, beta):
    """Pure-JAX reference of BertEmbeddings forward (eval mode)."""
    B, S = input_tokens.shape
    emb = (jnp.take(word_emb, input_tokens, axis=0)
           + pos_emb[:S][None, :, :]
           + type_emb[0][None, None, :])
    mean = jnp.mean(emb, axis=-1, keepdims=True)
    var = jnp.mean((emb - mean) ** 2, axis=-1, keepdims=True)
    normed = (emb - mean) / jnp.sqrt(var + LN_EPS)
    return normed * gamma + beta


if __name__ == "__main__":
    # Small, BERT-like synthetic config (real BERT-base: V=30522, H=768, P=512)
    B, S, H = 2, 8, 128
    V, P, T = 64, 16, 2

    key = jax.random.PRNGKey(0)
    k_ids, k_w, k_p, k_t, k_g, k_b = jax.random.split(key, 6)

    input_tokens = jax.random.randint(k_ids, (B, S), 0, V, dtype=jnp.int32)
    word_emb = jax.random.normal(k_w, (V, H), dtype=jnp.float32) * 0.02
    pos_emb = jax.random.normal(k_p, (P, H), dtype=jnp.float32) * 0.02
    type_emb = jax.random.normal(k_t, (T, H), dtype=jnp.float32) * 0.02
    gamma = 1.0 + 0.01 * jax.random.normal(k_g, (H,), dtype=jnp.float32)
    beta = 0.01 * jax.random.normal(k_b, (H,), dtype=jnp.float32)

    out = bert_embedding(input_tokens, word_emb, pos_emb, type_emb, gamma, beta)
    out = jax.block_until_ready(out)

    ref = bert_embedding_ref(input_tokens, word_emb, pos_emb, type_emb, gamma, beta)
    assert out.shape == (B, S, H)
    assert jnp.allclose(out, ref, atol=1e-5, rtol=1e-5), "mismatch vs reference"

    print("KERNEL_OK")
</pallas_src>

<mosaic_0001>
module attributes {stable_mosaic.version = 11 : i64} {
  func.func @bert_embedding_kernel(%arg0: i32, %arg1: i32, %arg2: memref<16xi32, #tpu.memory_space<smem>>, %arg3: memref<64x128xf32, #tpu.memory_space<any>>, %arg4: memref<8x128xf32, #tpu.memory_space<vmem>>, %arg5: memref<1x128xf32, #tpu.memory_space<vmem>>, %arg6: memref<1x128xf32, #tpu.memory_space<vmem>>, %arg7: memref<1x8x128xf32, #tpu.memory_space<vmem>>, %arg8: memref<8x128xf32, #tpu.memory_space<vmem>>, %arg9: memref<8x!tpu.dma_semaphore, #tpu.memory_space<semaphore_mem>>) attributes {dimension_semantics = [#tpu.dimension_semantics<parallel>, #tpu.dimension_semantics<parallel>], iteration_bounds = array<i64: 2, 1>, scalar_prefetch = 1 : i64, scratch_operands = 2 : i64, tpu.core_type = #tpu.core_type<tc>, window_params = [{}, {transform_indices = @transform_1, window_bounds = array<i64: 8, 128>}, {pipeline_mode = #tpu.pipeline_mode<synchronous>, transform_indices = @transform_2, window_bounds = array<i64: 1, 128>}, {pipeline_mode = #tpu.pipeline_mode<synchronous>, transform_indices = @transform_3, window_bounds = array<i64: 1, 128>}, {transform_indices = @transform_4, window_bounds = array<i64: 1, 8, 128>}]} {
    %c8_i32 = arith.constant 8 : i32
    %0 = arith.muli %arg0, %c8_i32 : i32
    %c8_i32_0 = arith.constant 8 : i32
    %1 = arith.muli %arg1, %c8_i32_0 : i32
    %2 = arith.addi %0, %1 : i32
    %c0_i32 = arith.constant 0 : i32
    %c8_i32_1 = arith.constant 8 : i32
    %3 = arith.addi %c0_i32, %c8_i32_1 : i32
    %c1_i32 = arith.constant 1 : i32
    scf.for %arg10 = %c0_i32 to %3 step %c1_i32  : i32 {
      %c1_i32_21 = arith.constant 1 : i32
      %33 = arith.muli %arg10, %c1_i32_21 : i32
      %c0_i32_22 = arith.constant 0 : i32
      %34 = arith.addi %c0_i32_22, %33 : i32
      %35 = arith.addi %2, %34 : i32
      %36 = arith.index_cast %35 : i32 to index
      %37 = memref.load %arg2[%36] : memref<16xi32, #tpu.memory_space<smem>>
      %c0_i32_23 = arith.constant 0 : i32
      %38 = arith.maxsi %37, %c0_i32_23 : i32
      %c63_i32 = arith.constant 63 : i32
      %39 = arith.minsi %38, %c63_i32 : i32
      %c0_i32_24 = arith.constant 0 : i32
      %40 = tpu.memref_slice %arg3[%39, %c0_i32_24] : memref<64x128xf32, #tpu.memory_space<any>> -> memref<1x128xf32, #tpu.memory_space<any>>
      %41 = tpu.memref_squeeze %40 : memref<1x128xf32, #tpu.memory_space<any>> -> memref<128xf32, #tpu.memory_space<any>>
      %c0_i32_25 = arith.constant 0 : i32
      %42 = tpu.memref_slice %arg8[%34, %c0_i32_25] : memref<8x128xf32, #tpu.memory_space<vmem>> -> memref<1x128xf32, #tpu.memory_space<vmem>>
      %43 = tpu.memref_squeeze %42 : memref<1x128xf32, #tpu.memory_space<vmem>> -> memref<128xf32, #tpu.memory_space<vmem>>
      %44 = tpu.memref_slice %arg9[%34] : memref<8x!tpu.dma_semaphore, #tpu.memory_space<semaphore_mem>> -> memref<1x!tpu.dma_semaphore, #tpu.memory_space<semaphore_mem>>
      %45 = tpu.memref_squeeze %44 : memref<1x!tpu.dma_semaphore, #tpu.memory_space<semaphore_mem>> -> memref<!tpu.dma_semaphore, #tpu.memory_space<semaphore_mem>>
      tpu.enqueue_dma source(%41 : memref<128xf32, #tpu.memory_space<any>>) target(%43 : memref<128xf32, #tpu.memory_space<vmem>>) target_semaphore(%45 : memref<!tpu.dma_semaphore, #tpu.memory_space<semaphore_mem>>)
    }
    %c8_i32_2 = arith.constant 8 : i32
    %c0_i32_3 = arith.constant 0 : i32
    %c8_i32_4 = arith.constant 8 : i32
    %4 = arith.addi %c0_i32_3, %c8_i32_4 : i32
    %c1_i32_5 = arith.constant 1 : i32
    scf.for %arg10 = %c0_i32_3 to %4 step %c1_i32_5  : i32 {
      %c1_i32_21 = arith.constant 1 : i32
      %33 = arith.muli %arg10, %c1_i32_21 : i32
      %c0_i32_22 = arith.constant 0 : i32
      %34 = arith.addi %c0_i32_22, %33 : i32
      %c0_i32_23 = arith.constant 0 : i32
      %c0_i32_24 = arith.constant 0 : i32
      %35 = tpu.memref_slice %arg3[%c0_i32_23, %c0_i32_24] : memref<64x128xf32, #tpu.memory_space<any>> -> memref<1x128xf32, #tpu.memory_space<any>>
      %36 = tpu.memref_squeeze %35 : memref<1x128xf32, #tpu.memory_space<any>> -> memref<128xf32, #tpu.memory_space<any>>
      %c0_i32_25 = arith.constant 0 : i32
      %37 = tpu.memref_slice %arg8[%34, %c0_i32_25] : memref<8x128xf32, #tpu.memory_space<vmem>> -> memref<1x128xf32, #tpu.memory_space<vmem>>
      %38 = tpu.memref_squeeze %37 : memref<1x128xf32, #tpu.memory_space<vmem>> -> memref<128xf32, #tpu.memory_space<vmem>>
      %39 = tpu.memref_slice %arg9[%34] : memref<8x!tpu.dma_semaphore, #tpu.memory_space<semaphore_mem>> -> memref<1x!tpu.dma_semaphore, #tpu.memory_space<semaphore_mem>>
      %40 = tpu.memref_squeeze %39 : memref<1x!tpu.dma_semaphore, #tpu.memory_space<semaphore_mem>> -> memref<!tpu.dma_semaphore, #tpu.memory_space<semaphore_mem>>
      tpu.wait_dma2 semaphore(%40 : memref<!tpu.dma_semaphore, #tpu.memory_space<semaphore_mem>>) src(%36 : memref<128xf32, #tpu.memory_space<any>>) dst(%38 : memref<128xf32, #tpu.memory_space<vmem>>)
    }
    %c8_i32_6 = arith.constant 8 : i32
    %c0 = arith.constant 0 : index
    %c0_7 = arith.constant 0 : index
    %5 = vector.load %arg8[%c0, %c0_7] : memref<8x128xf32, #tpu.memory_space<vmem>>, vector<8x128xf32>
    %c0_8 = arith.constant 0 : index
    %c0_9 = arith.constant 0 : index
    %6 = vector.load %arg4[%c0_8, %c0_9] : memref<8x128xf32, #tpu.memory_space<vmem>>, vector<8x128xf32>
    %7 = arith.addf %5, %6 : vector<8x128xf32>
    %cst = arith.constant dense<0.000000e+00> : vector<8xf32>
    %8 = vector.multi_reduction <add>, %7, %cst [1] : vector<8x128xf32> to vector<8xf32>
    %9 = vector.shape_cast %8 : vector<8xf32> to vector<8x1xf32>
    %cst_10 = arith.constant 1.280000e+02 : f32
    %10 = vector.broadcast %cst_10 : f32 to vector<8x1xf32>
    %11 = arith.divf %9, %10 : vector<8x1xf32>
    %12 = vector.broadcast %11 : vector<8x1xf32> to vector<8x128xf32>
    %13 = arith.subf %7, %12 : vector<8x128xf32>
    %14 = arith.mulf %13, %13 : vector<8x128xf32>
    %cst_11 = arith.constant dense<0.000000e+00> : vector<8xf32>
    %15 = vector.multi_reduction <add>, %14, %cst_11 [1] : vector<8x128xf32> to vector<8xf32>
    %16 = vector.shape_cast %15 : vector<8xf32> to vector<8x1xf32>
    %cst_12 = arith.constant 1.280000e+02 : f32
    %17 = vector.broadcast %cst_12 : f32 to vector<8x1xf32>
    %18 = arith.divf %16, %17 : vector<8x1xf32>
    %cst_13 = arith.constant 9.99999996E-13 : f32
    %19 = vector.broadcast %cst_13 : f32 to vector<8x1xf32>
    %20 = arith.addf %18, %19 : vector<8x1xf32>
    %21 = math.rsqrt %20 : vector<8x1xf32>
    %22 = vector.broadcast %21 : vector<8x1xf32> to vector<8x128xf32>
    %23 = arith.mulf %13, %22 : vector<8x128xf32>
    %c0_14 = arith.constant 0 : index
    %c0_15 = arith.constant 0 : index
    %24 = vector.load %arg5[%c0_14, %c0_15] : memref<1x128xf32, #tpu.memory_space<vmem>>, vector<1x128xf32>
    %25 = vector.broadcast %24 : vector<1x128xf32> to vector<8x128xf32>
    %26 = arith.mulf %23, %25 : vector<8x128xf32>
    %c0_16 = arith.constant 0 : index
    %c0_17 = arith.constant 0 : index
    %27 = vector.load %arg6[%c0_16, %c0_17] : memref<1x128xf32, #tpu.memory_space<vmem>>, vector<1x128xf32>
    %28 = vector.broadcast %27 : vector<1x128xf32> to vector<8x128xf32>
    %29 = arith.addf %26, %28 : vector<8x128xf32>
    %c0_18 = arith.constant 0 : index
    %c0_19 = arith.constant 0 : index
    %c0_20 = arith.constant 0 : index
    %30 = vector.load %arg7[%c0_18, %c0_19, %c0_20] : memref<1x8x128xf32, #tpu.memory_space<vmem>>, vector<1x8x128xf32>
    %31 = vector.shape_cast %30 : vector<1x8x128xf32> to vector<8x128xf32>
    %32 = vector.shape_cast %29 : vector<8x128xf32> to vector<1x8x128xf32>
    tpu.vector_store %arg7[%c0_18, %c0_19, %c0_20], %32 {strides = array<i32>} : memref<1x8x128xf32, #tpu.memory_space<vmem>>, vector<1x8x128xf32>,
    return
  }
  func.func @transform_1(%arg0: i32, %arg1: i32, %arg2: memref<16xi32, #tpu.memory_space<smem>>) -> (i32, i32) {
    %c0_i32 = arith.constant 0 : i32
    %c0_i32_0 = arith.constant 0 : i32
    return %arg1, %c0_i32 : i32, i32
  }
  func.func @transform_2(%arg0: i32, %arg1: i32, %arg2: memref<16xi32, #tpu.memory_space<smem>>) -> (i32, i32) {
    %c0_i32 = arith.constant 0 : i32
    %c0_i32_0 = arith.constant 0 : i32
    %c0_i32_1 = arith.constant 0 : i32
    return %c0_i32, %c0_i32_0 : i32, i32
  }
  func.func @transform_3(%arg0: i32, %arg1: i32, %arg2: memref<16xi32, #tpu.memory_space<smem>>) -> (i32, i32) {
    %c0_i32 = arith.constant 0 : i32
    %c0_i32_0 = arith.constant 0 : i32
    %c0_i32_1 = arith.constant 0 : i32
    return %c0_i32, %c0_i32_0 : i32, i32
  }
  func.func @transform_4(%arg0: i32, %arg1: i32, %arg2: memref<16xi32, #tpu.memory_space<smem>>) -> (i32, i32, i32) {
    %c0_i32 = arith.constant 0 : i32
    %c0_i32_0 = arith.constant 0 : i32
    return %arg0, %arg1, %c0_i32 : i32, i32, i32
  }
}

</mosaic_0001>

<bundles_post_ra>
// kernel: tpu_custom_call.1
= control target key start
LH: loop header
LB: loop body
LE: loop exit
PB: predicated region body
PF: predicated region fallthrough
CT: control target
= control target key end

     0   :  { %s688_s18 = smov [#allocation5]   ;;  %s880_s0 = inlined_call_operand.hbm [shape: s32[16], index: 0, kind: input, shape index: {}]   ;;  %s881_s1 = inlined_call_operand.hbm [shape: f32[64,128], index: 1, kind: input, shape index: {}]   ;;  %s882_s2 = inlined_call_operand.hbm [shape: f32[8,128], index: 2, kind: input, shape index: {}]   ;;  %s883_s3 = inlined_call_operand.vmem [shape: f32[1,128], index: 3, kind: input, shape index: {}]   ;;  %s884_s4 = inlined_call_operand.vmem [shape: f32[1,128], index: 4, kind: input, shape index: {}]   ;;  %s885_s5 = inlined_call_operand.hbm [shape: f32[2,8,128], index: 5, kind: output, shape index: {}]  }
   0x1   :  { %11 = dma.hbm_to_smem %s880_s0, 16, %s688_s18, [#allocation4] }
   0x2   :  { %644 = dma.done.wait [#allocation4], 16 }
   0x3   :  { %645 = vsyncadd [#allocation4], 4294967280 }
   0x4   :  { %13 = sfence }
   0x5   :  { %14 = vsyncpa [#allocation7], 0 }
   0x6   :  { %15 = vsyncpa [#allocation8], 0 }
   0x7   :  { %17 = vsyncpa [#allocation8 + $0x1], 0  ;;  %s725_s21 = smov 0   ;;  %s727_s22 = smov 0  }
   0x8   :  { %s729_s23 = smov 0   ;;  %s731_s24 = smov 0  }
   0x9   :  { %s733_s25 = smov 0   ;;  %s735_s26 = smov 0  }
   0xa LB: > { %s415_s0 = sadd.s32 4294967295, %s678_s26   ;;  %s416_s27 = sadd.s32 4294967294, %s678_s26   ;;  %s678_s26 = sphi %s735_s26, %s23_s26   ;;  %s674_s25 = sphi %s733_s25, %s899_s25   ;;  %s670_s24 = sphi %s731_s24, %s898_s24   ;;  %s666_s23 = sphi %s729_s23, %s897_s23   ;;  %s662_s22 = sphi %s727_s22, %s896_s22   ;;  %s658_s21 = sphi %s725_s21, %s895_s21  }
   0xb   : > { %s35_s28 = sadd.s32 1, %s674_s25  ;;  %s112_s29 = sadd.s32 1, %s666_s23 }
   0xc   : > { %p37_p0 = scmp.ge.s32.totalorder %s35_s28, 2  ;;  %p122_p1 = scmp.ne.s32.totalorder %s666_s23, %s662_s22 }
   0xd   : > { %p123_p2 = scmp.eq.s32.totalorder %s415_s0, 1  ;;  %p128_p3 = scmp.ne.s32.totalorder %s662_s22, %s658_s21 }
   0xe   : > { %s901_s28 = smov (%p37_p0, %s35_s28), 0  ;;  %p129_p5 = scmp.eq.s32.totalorder %s416_s27, 1 }
   0xf   : > { %p765_p4 = por %p123_p2, %p122_p1  ;;  %s107_s6 = ssub.s32 %s674_s25, %s901_s28 }
  0x10   : > { %p417_p6 = scmp.ge.s32.totalorder %s678_s26, 1  ;;  %p110_p7 = scmp.eq.s32.totalorder %s107_s6, 0 }
  0x11   : > { %p772_p8 = por %p129_p5, %p128_p3  ;;  %p136_p9 = scmp.lt.s32.totalorder %s678_s26, 3 }
  0x12   : > { %s778_s8 = scalar_select %p110_p7, %s666_s23, %s112_s29  }
  0x13   : > { %p780_p10 = pnand %p417_p6, %p136_p9  ;;  %p784_p11 = scmp.eq.s32.totalorder %s415_s0, 0 }
  0x14   : > { %s689_s11 = smov [#allocation6]  }
  0x15   : > { %p451_p12 = pneg %p780_p10  ;;  %s151_s12 = sshll.u32 %s689_s11, 4  ;;  %s152_s12 = int_to_ptr.vmem [resolvable:$true] %s151_s12 }
  0x16   : > { %s549_s13 = scalar_lea.vmem %s152_s12, 128  ;;  %p557_p5 = scmp.lt.s32.totalorder %s152_s12, %s152_s12 }
  0x17   : > { %p452_p13 = pnand %p784_p11, %p451_p12  ;;  %p550_p1 = scmp.ne.s32.totalorder %s152_s12, %s549_s13 }
  0x18   : > { %p558_p6 = scmp.lt.s32.totalorder %s549_s13, %s549_s13 }
  0x19   : > { %p540_p0 = pneg %p452_p13 }
  0x1a   : > { %p559_p7 = por %p558_p6, %p557_p5 }
  0x1b   : > { %p552_p2 = pnand %p550_p1, %p540_p0 }
  0x1d   : > { %p553_p3 = pneg %p552_p2 }
  0x1f   : > { %p560_p9 = pnand %p559_p7, %p553_p3 }
  0x21   : > { %563 = shalt.err (!%p560_p9)
}
  0x22   : > { %454 = dma.hbm_to_vmem [thread:$0]  (!%p452_p13), %s882_s2, 128, %s152_s12, [#allocation7]  }
  0x23   : > { %170 = sbr.rel (%p780_p10) target bundleno = 410 (0x19a), region = 32 }
  0x28   : > { %647 = dma.done.wait (%p784_p11), [#allocation7], 128  }
  0x29   : > { %649 = vsyncadd (%p784_p11), [#allocation7], 4294967168  ;;  %s886_s16 = sand.u32 1, %s662_s22   ;;  %s808_s20 = smov 0  }
  0x2a   : > { %s805_s18 = sshll.u32 %s886_s16, 3 }
  0x2b LB: >> { %s891_s17 = sshll.u32 %s670_s24, 3  ;;  %s206_s29 = scalar_lea.vmem [#allocation2], %s682_s20  ;;  %s682_s20 = sphi %s808_s20, %s197_s20  }
  0x2c   : >> { %s198_s0 = sadd.s32 %s682_s20, %s891_s17  ;;  %s215_s6 = sshll.u32 %s206_s29, 4  ;;  %s216_s6 = int_to_ptr.vmem [resolvable:$true] %s215_s6 }
  0x2d   : >> { %s199_s27 = sld [smem:[#allocation5 + %s198_s0]]  ;;  %s207_s13 = scalar_lea.sflag [#allocation3], %s682_s20 }
  0x2e   : >> { %s566_s17 = scalar_lea.hbm %s881_s1, 1024 }
  0x33   : >> { %p200_p10 = scmp.gt.s32.totalorder %s199_s27, 0  ;;  %p423_p11 = scmp.lt.s32.totalorder %s199_s27, 63 }
  0x35   : >> { %s903_s27 = smov (!%p200_p10, %s199_s27), 0 }
  0x36   : >> { %s905_s27 = smov (!%p423_p11, %s903_s27), 63 }
  0x37   : >> { %s428_s9 = sshll.u32 %s905_s27, 4 }
  0x38   : >> { %s205_s12 = scalar_lea.hbm %s881_s1, %s428_s9 }
  0x39   : >> { %s564_s14 = scalar_lea.hbm %s205_s12, 16  ;;  %p567_p13 = scmp.lt.s32.totalorder %s205_s12, %s881_s1 }
  0x3a   : >> { %p565_p12 = scmp.ne.s32.totalorder %s205_s12, %s564_s14  ;;  %p568_p0 = scmp.lt.s32.totalorder %s566_s17, %s564_s14 }
  0x3c   : >> { %p569_p1 = por %p568_p0, %p567_p13 }
  0x3e   : >> { %p570_p2 = pnand %p569_p1, %p565_p12 }
  0x40   : >> { %573 = shalt.err (!%p570_p2)  }
  0x41   : >> { %s574_s27 = scalar_lea.vmem %s216_s6, 16  ;;  %s690_s29 = smov [#allocation2]  }
  0x42   : >> { %p575_p3 = scmp.ne.s32.totalorder %s216_s6, %s574_s27  ;;  %s576_s10 = sshll.u32 %s690_s29, 4  ;;  %s577_s10 = int_to_ptr.vmem [resolvable:$false] %s576_s10 }
  0x43   : >> { %s578_s9 = scalar_lea.vmem %s577_s10, 128  ;;  %p579_p5 = scmp.lt.s32.totalorder %s216_s6, %s577_s10 }
  0x44   : >> { %p580_p6 = scmp.lt.s32.totalorder %s578_s9, %s574_s27 }
  0x46   : >> { %p581_p7 = por %p580_p6, %p579_p5 }
  0x48   : >> { %p582_p9 = pnand %p581_p7, %p575_p3 }
  0x4a   : >> { %585 = shalt.err (!%p582_p9)  }
  0x4b   : >> { %218 = dma.hbm_to_vmem [thread:$0]  %s205_s12, 16, %s216_s6, %s207_s13 }
  0x4c   : >> { %s197_s20 = sadd.s32 1, %s682_s20  }
  0x4d   : >> { %p194_p10 = scmp.ge.s32.totalorder %s197_s20, 8  }
  0x4e   : > { %s684_s16 = smov (%p194_p10), 0  }
  0x4f   : > { %196 = sbr.rel (!%p194_p10) target bundleno = 43 (0x2b), region = 99 }
  0x54 LB: >> { %s225_s17 = scalar_lea.sflag [#allocation3], %s686_s16  ;;  %s686_s16 = sphi %s684_s16, %s224_s16  }
  0x55   : >> { %650 = dma.done.wait %s225_s17, 16 }
  0x56   : >> { %651 = vsyncadd %s225_s17, 4294967280  ;;  %s224_s16 = sadd.s32 1, %s686_s16  }
  0x57   : >> { %p221_p11 = scmp.ge.s32.totalorder %s224_s16, 8  }
  0x58   : > { %v228_v0 = vld [vmem:[#allocation2] sm:$0xff] (%p221_p11)  ;;  %v229_v1 = vld [vmem:[#allocation6] sm:$0xff] (%p221_p11)  ;;  %s432_s12 = sshll.u32 (%p221_p11), %s670_s24, 7  ;;  %s892_s13 = scalar_lea.vmem (%p221_p11), [#allocation9], %s805_s18 }
  0x59   : > { %223 = sbr.rel (!%p221_p11) target bundleno = 84 (0x54), region = 110  ;;  %v230_v2 = vadd.f32 (%p221_p11), %v229_v1, %v228_v0  ;;  %v429_v11 = vld [vmem:[%s883_s3] ss:$0 sm:$0xff] (%p221_p11)  ;;  %s275_s14 = sshll.u32 (%p221_p11), %s892_s13, 4  ;;  %s276_s14 = int_to_ptr.vmem [resolvable:$true] %s275_s14 }
  0x5a   : > { %v430_v13 = vld [vmem:[%s884_s4] ss:$0 sm:$0xff] (%p221_p11)  ;;  %s273_s27 = scalar_lea.hbm (%p221_p11), %s885_s5, %s432_s12  ;;  %s893_s29 = smov (%p221_p11), %s892_s13 }
  0x5b   : > { %231 = vadd.xlane.f32.xlu0 (%p221_p11), %v230_v2  ;;  %s894_s10 = sand.u32 (%p221_p11), 1, %s662_s22   ;;  %s586_s16 = scalar_lea.vmem (%p221_p11), %s276_s14, 128 }
  0x5c   : > { %s261_s9 = scalar_lea.sflag (%p221_p11), [#allocation8], %s894_s10  ;;  %p587_p12 = scmp.ne.s32.totalorder (%p221_p11), %s276_s14, %s586_s16 }
  0x5d   : > { %s691_s17 = smov (%p221_p11), [#allocation9]  }
  0x5e   : > { %p588_p13 = pnand %p587_p12, %p765_p4  ;;  %s590_s24 = sshll.u32 %s691_s17, 4  ;;  %s591_s24 = int_to_ptr.vmem [resolvable:$false] %s590_s24 }
  0x5f   : > { %s592_s19 = scalar_lea.vmem %s591_s24, 256  ;;  %p593_p1 = scmp.lt.s32.totalorder %s276_s14, %s591_s24 }
  0x60   : > { %p589_p0 = pneg %p588_p13  ;;  %p594_p2 = scmp.lt.s32.totalorder %s592_s19, %s586_s16 }
  0x62   : > { %p595_p3 = por %p594_p2, %p593_p1 }
  0x64   : > { %p596_p5 = pnand %p595_p3, %p589_p0 }
  0xe4   : > { %v232_v3 = vpop.xlane.xlu0 %231 }
  0xe5   : > { %v234_v4 = vmul.f32 0.0078125, %v232_v3 }
  0xe7   : > { %v235_v5 = vsub.f32 %v230_v2, %v234_v4 }
  0xe9   : > { %v236_v6 = vmul.f32 %v235_v5, %v235_v5 }
  0xeb   : > { %237 = vadd.xlane.f32.xlu0 %v236_v6 }
 0x174   : > { %v238_v7 = vpop.xlane.xlu0 %237 }
 0x175   : > { %v239_v8 = vmul.f32 0.0078125, %v238_v7 }
 0x177   : > { %v240_v9 = vadd.f32 1e-12, %v239_v8 }
 0x179   : > { %528 = vrsqrt.f32 %v240_v9 }
 0x186   : > { %v529_v10 = vpop.eup %528 }
 0x187   : > { %v242_v12 = vmul.f32 %v529_v10, %v235_v5 }
 0x189   : > { %v250_v14 = vmul.f32 %v429_v11, %v242_v12 }
 0x18b   : > { %v258_v15 = vadd.f32 %v430_v13, %v250_v14 }
 0x18d   : > { %259 = vst [vmem:[%s893_s29] sm:$0xff] %v258_v15 }
 0x18e   : > { %599 = shalt.err (!%p596_p5)
}
 0x18f   : > { %s600_s20 = scalar_lea.hbm %s273_s27, 128  ;;  %s604_s11 = scalar_lea.hbm %s885_s5, 256 }
 0x190   : > { %p601_p6 = scmp.ne.s32.totalorder %s273_s27, %s600_s20  ;;  %p605_p10 = scmp.lt.s32.totalorder %s273_s27, %s885_s5 }
 0x191   : > { %p606_p11 = scmp.lt.s32.totalorder %s604_s11, %s600_s20 }
 0x192   : > { %p602_p7 = pnand %p601_p6, %p765_p4 }
 0x193   : > { %p607_p12 = por %p606_p11, %p605_p10 }
 0x194   : > { %p603_p9 = pneg %p602_p7 }
 0x196   : > { %p608_p13 = pnand %p607_p12, %p603_p9 }
 0x198   : > { %611 = shalt.err (!%p608_p13)
}
 0x199   : > { %449 = dma.vmem_to_hbm [thread:$0]  (%p765_p4), %s276_s14, 128, %s273_s27, %s261_s9  }
 0x19a PF: > { %p461_p0 = scmp.ge.s32.totalorder %s678_s26, 2  ;;  %s287_s15 = sand.u32 1, %s658_s21  }
 0x19b   : > { %s288_s0 = scalar_lea.sflag [#allocation8], %s287_s15 }
 0x19c   : > { %p456_p1 = pnand %p461_p0, %p772_p8 }
 0x19e   : > { %p457_p2 = pneg %p456_p1 }
 0x1a0   : > { %653 = dma.done.wait (%p457_p2), %s288_s0, 128  }
 0x1a1   : > { %655 = vsyncadd (%p457_p2), %s288_s0, 4294967168  ;;  %s23_s26 = sadd.s32 1, %s678_s26   ;;  %s895_s21 = smov %s662_s22 }
 0x1a2   : > { %p20_p3 = scmp.ge.s32.totalorder %s23_s26, 4   ;;  %s896_s22 = smov %s666_s23 }
 0x1a3   : > { %s897_s23 = smov %s778_s8  ;;  %s898_s24 = smov %s674_s25 }
 0x1a4   : > { %s899_s25 = smov %s901_s28  ;;  %22 = sbr.rel (!%p20_p3) target bundleno = 10 (0xa), region = 121 }
 0x1a9   :  { %293 = vsyncpa [#allocation7], 1 }
 0x1aa   :  { %295 = vsyncpa [#allocation7 + $0x1], 1 }
 0x1ab   :  { %296 = vsyncpa [#allocation8], 1 }
 0x1ac   :  { %298 = vsyncpa [#allocation8 + $0x1], 1 }
 0x1ad   :  { %299 = vsyncmov [#allocation3] }
 0x1b0   :  { %s300_s30 = vpop.sfrf %299 }
 0x1b1   :  { %p435_p4 = scmp.ne.s32.totalorder %s300_s30, 0 }
 0x1b3   :  { %304 = shalt.err (%p435_p4)  }
 0x1b4   :  { %306 = vsyncmov [#allocation3 + $0x1] }
 0x1b7   :  { %s307_s7 = vpop.sfrf %306 }
 0x1b8   :  { %p436_p8 = scmp.ne.s32.totalorder %s307_s7, 0 }
 0x1ba   :  { %311 = shalt.err (%p436_p8)  }
 0x1bb   :  { %313 = vsyncmov [#allocation3 + $0x2] }
 0x1be   :  { %s314_s8 = vpop.sfrf %313 }
 0x1bf   :  { %p437_p5 = scmp.ne.s32.totalorder %s314_s8, 0 }
 0x1c1   :  { %318 = shalt.err (%p437_p5)  }
 0x1c2   :  { %320 = vsyncmov [#allocation3 + $0x3] }
 0x1c5   :  { %s321_s28 = vpop.sfrf %320 }
 0x1c6   :  { %p438_p6 = scmp.ne.s32.totalorder %s321_s28, 0 }
 0x1c8   :  { %325 = shalt.err (%p438_p6)  }
 0x1c9   :  { %327 = vsyncmov [#allocation3 + $0x4] }
 0x1cc   :  { %s328_s1 = vpop.sfrf %327 }
 0x1cd   :  { %p439_p7 = scmp.ne.s32.totalorder %s328_s1, 0 }
 0x1cf   :  { %332 = shalt.err (%p439_p7)  }
 0x1d0   :  { %334 = vsyncmov [#allocation3 + $0x5] }
 0x1d3   :  { %s335_s2 = vpop.sfrf %334 }
 0x1d4   :  { %p440_p9 = scmp.ne.s32.totalorder %s335_s2, 0 }
 0x1d6   :  { %339 = shalt.err (%p440_p9)  }
 0x1d7   :  { %341 = vsyncmov [#allocation3 + $0x6] }
 0x1da   :  { %s342_s3 = vpop.sfrf %341 }
 0x1db   :  { %p441_p10 = scmp.ne.s32.totalorder %s342_s3, 0 }
 0x1dd   :  { %346 = shalt.err (%p441_p10)  }
 0x1de   :  { %348 = vsyncmov [#allocation3 + $0x7] }
 0x1e1   :  { %s349_s4 = vpop.sfrf %348 }
 0x1e2   :  { %p442_p11 = scmp.ne.s32.totalorder %s349_s4, 0 }
 0x1e4   :  { %353 = shalt.err (%p442_p11)  }

</bundles_post_ra>
